<compile_context>
chip_gen: v5e
topology: v5e:2x2
jax: 0.10.0
libtpu: 0.0.40
codegen_flags: <defaults>
</compile_context>

<pallas_src>
import functools

import jax
import jax.numpy as jnp
from jax import lax
from jax.experimental import pallas as pl
from jax.experimental.pallas import tpu as pltpu


def emd_squared_kernel(x_ref, t_ref, tri_ref, out_ref, *, true_b, block_b):
    pid = pl.program_id(0)

    x = x_ref[...].astype(jnp.float32)      # (TB, C) logits
    t = t_ref[...].astype(jnp.float32)      # (TB, C) target probabilities
    tri = tri_ref[...]                      # (C, C) ones where row <= col (resident)

    # softmax(input, dim=class) == exp(log_softmax(input, dim=class))
    m = jnp.max(x, axis=-1, keepdims=True)
    e = jnp.exp(x - m)
    p = e * pl.reciprocal(jnp.sum(e, axis=-1, keepdims=True), approx=False)

    # cumsum(p) - cumsum(t) == cumsum(p - t)  ->  single MXU matmul.
    d = p - t
    d_cdf = jnp.dot(d, tri, preferred_element_type=jnp.float32)   # (TB, C)

    per_sample = jnp.sum(d_cdf * d_cdf, axis=-1, keepdims=True)   # (TB, 1)

    # Mask rows past the true batch size.  Keep jnp.where (padded HBM rows may
    # be Inf/NaN; a multiply-by-mask would propagate them).
    row_ids = pid * block_b + lax.broadcasted_iota(jnp.int32, (block_b, 1), 0)
    per_sample = jnp.where(row_ids < true_b, per_sample, 0.0)

    partial = jnp.sum(per_sample)           # scalar partial sum for this block

    # Splat the scalar into the whole lane-aligned (1, 8, 128) tile: a single
    # unmasked full-vreg store, no per-step iota/where.  Wrapper reads [i,0,0].
    out_ref[...] = jnp.broadcast_to(partial, (1, 8, 128))


def _vmem_limit_bytes():
    """Generation-aware VMEM allowance: ~96 MiB on 128-MiB chips, ~48 MiB on v7x."""
    phys = None
    try:
        info = pltpu.get_tpu_info()
        phys = getattr(info, "vmem_capacity_bytes", None)
    except Exception:
        phys = None
    if not phys:
        phys = 64 << 20                      # conservative (v7x-sized) fallback
    phys = int(phys)
    # Leave >= 16 MiB headroom for Mosaic internal scratch; never ask > 96 MiB.
    return int(max(32 << 20, min(phys - (16 << 20), 96 << 20)))


def _pick_block_b(B, C, vmem_limit, tri_single_buffered):
    """Largest batch tile fitting the VMEM budget, with G >= 2 when possible."""
    tri_copies = 1 if tri_single_buffered else 2
    tri_bytes = tri_copies * C * C * 4
    out_bytes = 2 * 8 * 128 * 4
    headroom = 4 << 20
    budget = vmem_limit - tri_bytes - out_bytes - headroom
    # Per batch row: x, t double-buffered input blocks (2 arrays x 2 buffers,
    # worst case f32) plus ~4 rows of f32 temporaries (p, d, d_cdf, ...).
    per_row = (2 * 2 + 4) * C * 4
    tb = budget // per_row if budget > 0 else 8
    tb = int(max(8, tb))
    # Keep the parallel grid axis at >= 2 blocks so both v7x TensorCores get
    # work; costs only ~0.35us of extra per-step overhead on 1-TC chips.
    if B > 8:
        half = ((-(-B // 2)) + 7) // 8 * 8
        tb = min(tb, half)
    if tb >= B:
        return B                             # single block == full dim is always legal
    return max(8, (tb // 8) * 8)             # keep the sublane dim a multiple of 8


def emd_squared_loss(inp, tgt, *, block_b=None):
    assert inp.shape == tgt.shape and inp.ndim == 2
    B, C = inp.shape

    vmem_limit = _vmem_limit_bytes()
    tri_single = (C * C * 4) >= (1 << 20)    # single-buffer the tri only when it is big

    TB = _pick_block_b(B, C, vmem_limit, tri_single) if block_b is None else block_b
    G = pl.cdiv(B, TB)

    # Triangular ones matrix built once on the host side: tri[k, j] = 1 if k <= j,
    # so (d @ tri)[:, j] = sum_{k<=j} d[:, k] = cumsum(d)[:, j].
    row = jnp.arange(C, dtype=jnp.int32)[:, None]
    col = jnp.arange(C, dtype=jnp.int32)[None, :]
    tri = (row <= col).astype(jnp.float32)

    if tri_single:
        # Constant index_map -> a second buffer would never be used; reclaim it.
        tri_spec = pl.BlockSpec((C, C), lambda i: (0, 0), pipeline_mode=pl.Buffered(1))
    else:
        tri_spec = pl.BlockSpec((C, C), lambda i: (0, 0))

    partials = pl.pallas_call(
        functools.partial(emd_squared_kernel, true_b=B, block_b=TB),
        out_shape=jax.ShapeDtypeStruct((G, 8, 128), jnp.float32),
        grid=(G,),
        in_specs=[
            pl.BlockSpec((TB, C), lambda i: (i, 0)),
            pl.BlockSpec((TB, C), lambda i: (i, 0)),
            tri_spec,                                  # constant block: stays resident
        ],
        out_specs=pl.BlockSpec((1, 8, 128), lambda i: (i, 0, 0)),
        compiler_params=pltpu.CompilerParams(
            dimension_semantics=("parallel",),
            vmem_limit_bytes=vmem_limit,
        ),
    )(inp, tgt, tri)

    # Finish the mean in the wrapper (divide by the TRUE batch size).
    return jnp.sum(partials[:, 0, 0]) / jnp.float32(B)


def emd_squared_loss_ref(inp, tgt):
    # Pure-JAX reference mirroring the PyTorch module.
    p = jax.nn.softmax(inp.astype(jnp.float32), axis=1)
    p_cdf = jnp.cumsum(p, axis=1)
    t_cdf = jnp.cumsum(tgt.astype(jnp.float32), axis=1)
    return jnp.mean(jnp.sum((p_cdf - t_cdf) ** 2, axis=1))


if __name__ == "__main__":
    key = jax.random.PRNGKey(0)
    k1, k2, k3, k4 = jax.random.split(key, 4)

    # Small shapes consistent with the module: (batch, num_classes).
    B, C = 8, 16
    logits = jax.random.normal(k1, (B, C), dtype=jnp.float32)
    raw = jax.random.uniform(k2, (B, C), dtype=jnp.float32) + 0.1
    target = raw / jnp.sum(raw, axis=1, keepdims=True)

    loss = jax.block_until_ready(emd_squared_loss(logits, target))
    ref = emd_squared_loss_ref(logits, target)
    assert jnp.allclose(loss, ref, rtol=1e-4, atol=1e-5), (loss, ref)

    # Ragged-batch case exercising the multi-block grid + row masking.
    B2, C2 = 20, 16
    logits2 = jax.random.normal(k3, (B2, C2), dtype=jnp.float32)
    raw2 = jax.random.uniform(k4, (B2, C2), dtype=jnp.float32) + 0.1
    target2 = raw2 / jnp.sum(raw2, axis=1, keepdims=True)

    loss2 = jax.block_until_ready(emd_squared_loss(logits2, target2, block_b=8))
    ref2 = emd_squared_loss_ref(logits2, target2)
    assert jnp.allclose(loss2, ref2, rtol=1e-4, atol=1e-5), (loss2, ref2)

    # bf16 inputs: kernel upcasts internally; HBM traffic of this
    # bandwidth-bound kernel is halved.
    logits_bf = logits.astype(jnp.bfloat16)
    target_bf = target.astype(jnp.bfloat16)
    loss_bf = jax.block_until_ready(emd_squared_loss(logits_bf, target_bf))
    ref_bf = emd_squared_loss_ref(logits_bf, target_bf)
    assert jnp.allclose(loss_bf, ref_bf, rtol=1e-3, atol=1e-4), (loss_bf, ref_bf)

    print("KERNEL_OK")
</pallas_src>

<mosaic_0001>
module attributes {stable_mosaic.version = 11 : i64} {
  func.func @emd_squared_kernel(%arg0: i32, %arg1: memref<8x16xf32, #tpu.memory_space<vmem>>, %arg2: memref<8x16xf32, #tpu.memory_space<vmem>>, %arg3: memref<16x16xf32, #tpu.memory_space<vmem>>, %arg4: memref<1x8x128xf32, #tpu.memory_space<vmem>>) attributes {dimension_semantics = [#tpu.dimension_semantics<parallel>], iteration_bounds = array<i64: 1>, scalar_prefetch = 0 : i64, scratch_operands = 0 : i64, tpu.core_type = #tpu.core_type<tc>, window_params = [{transform_indices = @transform_0, window_bounds = array<i64: 8, 16>}, {transform_indices = @transform_1, window_bounds = array<i64: 8, 16>}, {pipeline_mode = #tpu.pipeline_mode<synchronous>, transform_indices = @transform_2, window_bounds = array<i64: 16, 16>}, {transform_indices = @transform_3, window_bounds = array<i64: 1, 8, 128>}]} {
    %c0 = arith.constant 0 : index
    %c0_0 = arith.constant 0 : index
    %0 = vector.load %arg1[%c0, %c0_0] : memref<8x16xf32, #tpu.memory_space<vmem>>, vector<8x16xf32>
    %c0_1 = arith.constant 0 : index
    %c0_2 = arith.constant 0 : index
    %1 = vector.load %arg2[%c0_1, %c0_2] : memref<8x16xf32, #tpu.memory_space<vmem>>, vector<8x16xf32>
    %c0_3 = arith.constant 0 : index
    %c0_4 = arith.constant 0 : index
    %2 = vector.load %arg3[%c0_3, %c0_4] : memref<16x16xf32, #tpu.memory_space<vmem>>, vector<16x16xf32>
    %cst = arith.constant dense<0xFF800000> : vector<8xf32>
    %3 = vector.multi_reduction <maximumf>, %0, %cst [1] : vector<8x16xf32> to vector<8xf32>
    %4 = vector.shape_cast %3 : vector<8xf32> to vector<8x1xf32>
    %5 = vector.broadcast %4 : vector<8x1xf32> to vector<8x16xf32>
    %6 = arith.subf %0, %5 : vector<8x16xf32>
    %7 = math.exp %6 : vector<8x16xf32>
    %cst_5 = arith.constant dense<0.000000e+00> : vector<8xf32>
    %8 = vector.multi_reduction <add>, %7, %cst_5 [1] : vector<8x16xf32> to vector<8xf32>
    %9 = vector.shape_cast %8 : vector<8xf32> to vector<8x1xf32>
    %10 = tpu.reciprocal %9 : vector<8x1xf32> -> vector<8x1xf32>
    %11 = vector.broadcast %10 : vector<8x1xf32> to vector<8x16xf32>
    %12 = arith.mulf %7, %11 : vector<8x16xf32>
    %13 = arith.subf %12, %1 : vector<8x16xf32>
    %cst_6 = arith.constant dense<0.000000e+00> : vector<8x16xf32>
    %14 = tpu.matmul %13, %2, %cst_6 {dimension_numbers = #tpu.dot_dimension_numbers<[1], [0], [0], [1], [0, 0, 1, 1], [], []>} : vector<8x16xf32>, vector<16x16xf32>, vector<8x16xf32> -> vector<8x16xf32>
    %15 = arith.mulf %14, %14 : vector<8x16xf32>
    %cst_7 = arith.constant dense<0.000000e+00> : vector<8xf32>
    %16 = vector.multi_reduction <add>, %15, %cst_7 [1] : vector<8x16xf32> to vector<8xf32>
    %17 = vector.shape_cast %16 : vector<8xf32> to vector<8x1xf32>
    %c8_i32 = arith.constant 8 : i32
    %18 = arith.muli %arg0, %c8_i32 : i32
    %19 = tpu.iota {dimensions = array<i32: 0>} : vector<8x1xi32>
    %20 = vector.broadcast %18 : i32 to vector<8x1xi32>
    %21 = arith.addi %20, %19 : vector<8x1xi32>
    %c8_i32_8 = arith.constant 8 : i32
    %22 = vector.broadcast %c8_i32_8 : i32 to vector<8x1xi32>
    %23 = arith.cmpi slt, %21, %22 : vector<8x1xi32>
    %cst_9 = arith.constant 0.000000e+00 : f32
    %24 = vector.broadcast %cst_9 : f32 to vector<8x1xf32>
    %25 = arith.select %23, %17, %24 : vector<8x1xi1>, vector<8x1xf32>
    %26 = vector.shape_cast %25 : vector<8x1xf32> to vector<1x8x1xf32>
    %cst_10 = arith.constant dense<0.000000e+00> : vector<1xf32>
    %27 = vector.multi_reduction <add>, %26, %cst_10 [1, 2] : vector<1x8x1xf32> to vector<1xf32>
    %28 = vector.shape_cast %27 : vector<1xf32> to vector<1x1x1xf32>
    %29 = vector.extract %28[0, 0, 0] : f32 from vector<1x1x1xf32>
    %30 = vector.broadcast %29 : f32 to vector<1x8x128xf32>
    %c0_11 = arith.constant 0 : index
    %c0_12 = arith.constant 0 : index
    %c0_13 = arith.constant 0 : index
    %31 = vector.load %arg4[%c0_11, %c0_12, %c0_13] : memref<1x8x128xf32, #tpu.memory_space<vmem>>, vector<1x8x128xf32>
    tpu.vector_store %arg4[%c0_11, %c0_12, %c0_13], %30 {strides = array<i32>} : memref<1x8x128xf32, #tpu.memory_space<vmem>>, vector<1x8x128xf32>,
    return
  }
  func.func @transform_0(%arg0: i32) -> (i32, i32) {
    %c0_i32 = arith.constant 0 : i32
    %c0_i32_0 = arith.constant 0 : i32
    return %arg0, %c0_i32 : i32, i32
  }
  func.func @transform_1(%arg0: i32) -> (i32, i32) {
    %c0_i32 = arith.constant 0 : i32
    %c0_i32_0 = arith.constant 0 : i32
    return %arg0, %c0_i32 : i32, i32
  }
  func.func @transform_2(%arg0: i32) -> (i32, i32) {
    %c0_i32 = arith.constant 0 : i32
    %c0_i32_0 = arith.constant 0 : i32
    %c0_i32_1 = arith.constant 0 : i32
    return %c0_i32, %c0_i32_0 : i32, i32
  }
  func.func @transform_3(%arg0: i32) -> (i32, i32, i32) {
    %c0_i32 = arith.constant 0 : i32
    %c0_i32_0 = arith.constant 0 : i32
    %c0_i32_1 = arith.constant 0 : i32
    return %arg0, %c0_i32, %c0_i32_0 : i32, i32, i32
  }
}

</mosaic_0001>

<bundles_post_ra>
// kernel: tpu_custom_call.1
= control target key start
LH: loop header
LB: loop body
LE: loop exit
PB: predicated region body
PF: predicated region fallthrough
CT: control target
= control target key end

     0   :  { %8 = vsyncpa [#allocation3], 0  ;;  %s310_s0 = inlined_call_operand.hbm [shape: f32[8,16], index: 0, kind: input, shape index: {}]   ;;  %s311_s1 = inlined_call_operand.hbm [shape: f32[8,16], index: 1, kind: input, shape index: {}]   ;;  %s312_s2 = inlined_call_operand.hbm [shape: f32[16,16], index: 2, kind: input, shape index: {}]   ;;  %s313_s3 = inlined_call_operand.hbm [shape: f32[1,8,128], index: 3, kind: output, shape index: {}]  }
   0x1   :  { %9 = vsyncpa [#allocation6], 0  ;;  %s27_s14 = sshll.u32 %s311_s1, 4  ;;  %s28_s14 = int_to_ptr.hbm [resolvable:$true] %s27_s14 }
   0x2   :  { %10 = vsyncpa [#allocation4], 0  ;;  %s268_s15 = smov [#allocation5]   ;;  %s16_s19 = sshll.u32 %s310_s0, 4  ;;  %s17_s19 = int_to_ptr.hbm [resolvable:$true] %s16_s19 }
   0x3   :  { %s29_s16 = sshll.u32 %s268_s15, 4  ;;  %s269_s20 = smov [#allocation2]   ;;  %s30_s16 = int_to_ptr.vmem [resolvable:$true] %s29_s16 }
   0x4   :  { %32 = dma.hbm_to_vmem [thread:$0]  %s28_s14, 128, %s30_s16, [#allocation6]  }
   0x5   :  { %s18_s21 = sshll.u32 %s269_s20, 4  ;;  %s37_s24 = sshll.u32 %s312_s2, 4  ;;  %s19_s21 = int_to_ptr.vmem [resolvable:$true] %s18_s21  ;;  %s38_s24 = int_to_ptr.hbm [resolvable:$true] %s37_s24 }
   0x6   :  { %21 = dma.hbm_to_vmem [thread:$0]  %s17_s19, 128, %s19_s21, [#allocation3]  }
   0x7   :  { %s270_s1 = smov [#allocation7]   ;;  %s271_s26 = smov 128  }
   0x8   :  { %s39_s25 = sshll.u32 %s270_s1, 4  ;;  %s272_s27 = smov 8   ;;  %s40_s25 = int_to_ptr.vmem [resolvable:$true] %s39_s25 }
   0x9   :  { %45 = dma.hbm_to_vmem [thread:$0]  %s38_s24, 256, %s40_s25, [#allocation6], %s271_s26, %s271_s26, %s272_s27  }
   0xa   :  { %262 = dma.done.wait [#allocation3], 128  }
   0xb   :  { %263 = vsyncadd [#allocation3], 4294967168 }
   0xc   :  { %264 = dma.done.wait [#allocation6], 384  }
   0xd   :  { %265 = vsyncadd [#allocation6], 4294966912  ;;  %vm62_vm0 = vcmask 130048   ;;  %v58_v0 = vld [vmem:[#allocation2] sm:$0xff]  ;;  %v61_v7 = vld [vmem:[#allocation7 + $0x8] sm:$0xff]  ;;  %vm122_vm5 = vcmask 7168  }
   0xe   :  { %v63_v1 = vsel %vm62_vm0, %v58_v0, -inf  ;;  %v60_v8 = vld [vmem:[#allocation7] sm:$0xff]  ;;  %105 = vmatpush.msra.mxu0 %v61_v7  ;;  %v59_v19 = vld [vmem:[#allocation5] sm:$0xff]  ;;  %s273_s0 = smov [#allocation8]   ;;  %s142_s30 = sshll.u32 %s313_s3, 4  ;;  %s143_s30 = int_to_ptr.hbm [resolvable:$true] %s142_s30 }
   0xf   :  { %64 = vmax.xlane.f32.xlu0 %v63_v1  ;;  %s140_s2 = sshll.u32 %s273_s0, 4  ;;  %s141_s2 = int_to_ptr.vmem [resolvable:$true] %s140_s2 }
  0x10   :  { %106 = vmatpush.msra.mxu0 %v60_v8 }
  0x82   :  { %v65_v2 = vpop.xlane.xlu0 %64 }
  0x83   :  { %v66_v3 = vsub.f32 %v58_v0, %v65_v2 }
  0x85   :  { %v67_v4 = vmul.f32 1.442695, %v66_v3 }
  0x87   :  { %162 = vpow2.f32 %v67_v4 }
  0x8d   :  { %v163_v5 = vpop.eup %162 }
  0x8e   :  { %v69_v6 = vsel %vm62_vm0, %v163_v5, 0.0 }
  0x8f   :  { %70 = vadd.xlane.f32.xlu0 %v69_v6 }
 0x102   :  { %v71_v9 = vpop.xlane.xlu0 %70 }
 0x103   :  { %164 = vrcp.f32 %v71_v9  ;;  %v83_v13 = vand.u32 2147483648, %v71_v9  ;;  %v81_v15 = vand.u32 2147483647, %v71_v9  ;;  %vm77_vm2 = vweird.f32 %v71_v9 }
 0x105   :  { %v84_v17 = vor.u32 1.1754944e-38, %v83_v13  ;;  %vm82_vm4 = vcmp.eq.f32.partialorder %v81_v15, 8.507059e+37 }
 0x109   :  { %v165_v10 = vpop.eup %164 }
 0x10a   :  { %v73_v11 = vmul.f32 %v165_v10, %v71_v9  ;;  %vm78_vm1 = vweird.f32 %v165_v10 }
 0x10b   :  { %vm79_vm3 = vmor %vm77_vm2, %vm78_vm1 }
 0x10c   :  { %v74_v12 = vsub.f32 1.0, %v73_v11 }
 0x10e   :  { %v75_v14 = vmul.f32 %v165_v10, %v74_v12 }
 0x110   :  { %v76_v16 = vadd.f32 %v165_v10, %v75_v14 }
 0x112   :  { %v80_v18 = vsel %vm79_vm3, %v165_v10, %v76_v16 }
 0x113   :  { %v85_v20 = vsel %vm82_vm4, %v84_v17, %v80_v18 }
 0x114   :  { %v86_v21 = vmul.f32 %v163_v5, %v85_v20 }
 0x116   :  { %v87_v22 = vsub.f32 %v86_v21, %v59_v19 }
 0x118   :  { %153 = vmatmul.msk.f32.vlgmr.msra.gmra.mxu0 %vm62_vm0, %v87_v22 }
 0x195   :  { %v108_v23 = vpop.f32.mrf.mxu0 }
 0x196   :  { %v111_v24 = vmul.f32 %v108_v23, %v108_v23 }
 0x198   :  { %v112_v25 = vsel %vm62_vm0, %v111_v24, 0.0 }
 0x199   :  { %113 = vadd.xlane.f32.xlu1 %v112_v25 }
 0x20c   :  { %v114_v26 = vpop.xlane.xlu1 %113 }
 0x20d   :  { %v123_v27 = vsel %vm122_vm5, %v114_v26, 0.0 }
 0x20e   :  { %124 = vadd.xlane.f32.xlu1 %v123_v27 }
 0x281   :  { %v125_v28 = vpop.xlane.xlu1 %124 }
 0x282   :  { %v126_v29 = vrot.slane %v125_v28, 4 }
 0x284   :  { %v127_v30 = vadd.f32 %v126_v29, %v125_v28 }
 0x286   :  { %v128_v31 = vrot.slane %v127_v30, 2 }
 0x288   :  { %v129_v32 = vadd.f32 %v128_v31, %v127_v30 }
 0x28a   :  { %v130_v33 = vrot.slane %v129_v32, 1 }
 0x28c   :  { %v131_v34 = vadd.f32 %v130_v33, %v129_v32 }
 0x28e   :  { %154 = vpush %v131_v34 }
 0x2bf   :  { %s155_s4 = spop %154 }
 0x2c0   :  { %v133_v35 = vstv %s155_s4 }
 0x2c1   :  { %134 = vst [vmem:[#allocation8] sm:$0xff] %v133_v35 }
 0x2c2   :  { %145 = dma.vmem_to_hbm [thread:$0]  %s141_s2, 128, %s143_s30, [#allocation4]  }
 0x2c3   :  { %266 = dma.done.wait [#allocation4], 128  }
 0x2c4   :  { %267 = vsyncadd [#allocation4], 4294967168 }
 0x2c5   :  { %150 = vsyncpa [#allocation3], 1 }
 0x2c6   :  { %151 = vsyncpa [#allocation6], 1 }
 0x2c7   :  { %152 = vsyncpa [#allocation4], 1 }

</bundles_post_ra>
